<compile_context>
chip_gen: v7x
topology: tpu7x:2x2x1
jax: 0.10.0
libtpu: 0.0.40
codegen_flags: <defaults>
</compile_context>

<pallas_src>
import math

import jax
import jax.numpy as jnp
from jax.experimental import pallas as pl
from jax.experimental.pallas import tpu as pltpu

IN_FEATURES = 784
OUT_FEATURES = 10
PADDED_OUT = 128  # lane-dense output width


def _round_up(v: int, m: int) -> int:
    return ((v + m - 1) // m) * m


def _linear_kernel(x_ref, w_ref, b_ref, o_ref):
    # One MXU matmul per batch tile: (TILE_N, 784) bf16 @ (784, 128) bf16
    # accumulated in f32, plus an f32 bias broadcast. Lane-dense 128-wide store.
    y = jnp.dot(x_ref[...], w_ref[...], preferred_element_type=jnp.float32)
    o_ref[...] = (y + b_ref[...]).astype(o_ref.dtype)


def mnist_logistic_forward(x, w, b, *, tile_n: int = 1024):
    """Forward pass of nn.Linear(784, 10): y = x @ W.T + b.

    x: (N, 784) float32
    w: (10, 784) float32  (PyTorch layout: (out_features, in_features))
    b: (10,)    float32
    returns: (N, 10) float32
    """
    n = x.shape[0]

    # Lane-pad weight/bias to 128 output columns (zeros in the padded lanes).
    w_t = jnp.zeros((IN_FEATURES, PADDED_OUT), jnp.float32)
    w_t = w_t.at[:, :OUT_FEATURES].set(jnp.transpose(w))
    b_pad = jnp.zeros((1, PADDED_OUT), jnp.float32)
    b_pad = b_pad.at[:, :OUT_FEATURES].set(b.reshape(1, OUT_FEATURES))

    # bf16 inputs for the MXU / halved HBM traffic; accumulation stays f32.
    x_bf = x.astype(jnp.bfloat16)
    w_bf = w_t.astype(jnp.bfloat16)

    # Tile choice: whole batch as one step if it is small, otherwise tile_n
    # rows per step. Tile must be a multiple of 8 (sublane rule).
    tile = min(tile_n, _round_up(n, 8))
    tile = _round_up(tile, 8)
    n_pad = _round_up(n, tile)
    if n_pad != n:
        x_bf = jnp.pad(x_bf, ((0, n_pad - n), (0, 0)))

    grid = (n_pad // tile,)

    out_padded = pl.pallas_call(
        _linear_kernel,
        out_shape=jax.ShapeDtypeStruct((n_pad, PADDED_OUT), jnp.float32),
        grid_spec=pltpu.PrefetchScalarGridSpec(
            num_scalar_prefetch=0,
            grid=grid,
            in_specs=[
                pl.BlockSpec((tile, IN_FEATURES), lambda i: (i, 0)),
                pl.BlockSpec((IN_FEATURES, PADDED_OUT), lambda i: (0, 0)),
                pl.BlockSpec((1, PADDED_OUT), lambda i: (0, 0)),
            ],
            out_specs=pl.BlockSpec((tile, PADDED_OUT), lambda i: (i, 0)),
        ),
        compiler_params=pltpu.CompilerParams(
            dimension_semantics=("parallel",)
        ),
    )(x_bf, w_bf, b_pad)

    # Strip batch padding and the padded output lanes.
    return out_padded[:n, :OUT_FEATURES]


if __name__ == "__main__":
    key = jax.random.PRNGKey(0)
    k_x, k_w, k_b = jax.random.split(key, 3)

    bs = 64  # same batch size as the reference script

    # Deterministic parameter init mirroring nn.Linear's default
    # (uniform in [-1/sqrt(fan_in), 1/sqrt(fan_in)]).
    bound = 1.0 / math.sqrt(IN_FEATURES)
    w = jax.random.uniform(
        k_w, (OUT_FEATURES, IN_FEATURES), jnp.float32, -bound, bound
    )  # PyTorch layout (out, in)
    b = jax.random.uniform(k_b, (OUT_FEATURES,), jnp.float32, -bound, bound)

    # Example input: flattened MNIST-like batch (bs, 784).
    x = jax.random.uniform(k_x, (bs, IN_FEATURES), jnp.float32)

    out = mnist_logistic_forward(x, w, b)
    out = jax.block_until_ready(out)
    assert out.shape == (bs, OUT_FEATURES)

    # Sanity check 1: matched-precision reference (bf16 inputs, f32 accumulate).
    ref_bf = (
        jnp.dot(
            x.astype(jnp.bfloat16),
            jnp.transpose(w).astype(jnp.bfloat16),
            preferred_element_type=jnp.float32,
        )
        + b
    )
    assert jnp.allclose(out, ref_bf, atol=2e-3, rtol=2e-3)

    # Sanity check 2: full-f32 reference with tolerance for bf16 input rounding.
    ref_f32 = x @ w.T + b
    assert jnp.allclose(out, ref_f32, atol=3e-2, rtol=3e-2)

    print("KERNEL_OK")
</pallas_src>

<mosaic_0001>
module attributes {stable_mosaic.version = 11 : i64} {
  func.func @_linear_kernel(%arg0: i32, %arg1: memref<64x784xbf16, #tpu.memory_space<vmem>>, %arg2: memref<784x128xbf16, #tpu.memory_space<vmem>>, %arg3: memref<1x128xf32, #tpu.memory_space<vmem>>, %arg4: memref<64x128xf32, #tpu.memory_space<vmem>>) attributes {dimension_semantics = [#tpu.dimension_semantics<parallel>], iteration_bounds = array<i64: 1>, scalar_prefetch = 0 : i64, scratch_operands = 0 : i64, tpu.core_type = #tpu.core_type<tc>, window_params = [{transform_indices = @transform_0, window_bounds = array<i64: 64, 784>}, {pipeline_mode = #tpu.pipeline_mode<synchronous>, transform_indices = @transform_1, window_bounds = array<i64: 784, 128>}, {pipeline_mode = #tpu.pipeline_mode<synchronous>, transform_indices = @transform_2, window_bounds = array<i64: 1, 128>}, {transform_indices = @transform_3, window_bounds = array<i64: 64, 128>}]} {
    %c0 = arith.constant 0 : index
    %c0_0 = arith.constant 0 : index
    %0 = vector.load %arg1[%c0, %c0_0] : memref<64x784xbf16, #tpu.memory_space<vmem>>, vector<64x784xbf16>
    %c0_1 = arith.constant 0 : index
    %c0_2 = arith.constant 0 : index
    %1 = vector.load %arg2[%c0_1, %c0_2] : memref<784x128xbf16, #tpu.memory_space<vmem>>, vector<784x128xbf16>
    %cst = arith.constant dense<0.000000e+00> : vector<64x128xf32>
    %2 = tpu.matmul %0, %1, %cst {dimension_numbers = #tpu.dot_dimension_numbers<[1], [0], [0], [1], [0, 0, 1, 1], [], []>} : vector<64x784xbf16>, vector<784x128xbf16>, vector<64x128xf32> -> vector<64x128xf32>
    %c0_3 = arith.constant 0 : index
    %c0_4 = arith.constant 0 : index
    %3 = vector.load %arg3[%c0_3, %c0_4] : memref<1x128xf32, #tpu.memory_space<vmem>>, vector<1x128xf32>
    %4 = vector.broadcast %3 : vector<1x128xf32> to vector<64x128xf32>
    %5 = arith.addf %2, %4 : vector<64x128xf32>
    %c0_5 = arith.constant 0 : index
    %c0_6 = arith.constant 0 : index
    %6 = vector.load %arg4[%c0_5, %c0_6] : memref<64x128xf32, #tpu.memory_space<vmem>>, vector<64x128xf32>
    tpu.vector_store %arg4[%c0_5, %c0_6], %5 {strides = array<i32>} : memref<64x128xf32, #tpu.memory_space<vmem>>, vector<64x128xf32>,
    return
  }
  func.func @transform_0(%arg0: i32) -> (i32, i32) {
    %c0_i32 = arith.constant 0 : i32
    %c0_i32_0 = arith.constant 0 : i32
    return %arg0, %c0_i32 : i32, i32
  }
  func.func @transform_1(%arg0: i32) -> (i32, i32) {
    %c0_i32 = arith.constant 0 : i32
    %c0_i32_0 = arith.constant 0 : i32
    %c0_i32_1 = arith.constant 0 : i32
    return %c0_i32, %c0_i32_0 : i32, i32
  }
  func.func @transform_2(%arg0: i32) -> (i32, i32) {
    %c0_i32 = arith.constant 0 : i32
    %c0_i32_0 = arith.constant 0 : i32
    %c0_i32_1 = arith.constant 0 : i32
    return %c0_i32, %c0_i32_0 : i32, i32
  }
  func.func @transform_3(%arg0: i32) -> (i32, i32) {
    %c0_i32 = arith.constant 0 : i32
    %c0_i32_0 = arith.constant 0 : i32
    return %arg0, %c0_i32 : i32, i32
  }
}

</mosaic_0001>

<bundles_post_ra>
// kernel: tpu_custom_call.1
= control target key start
LH: loop header
LB: loop body
LE: loop exit
PB: predicated region body
PF: predicated region fallthrough
CT: control target
= control target key end

     0   :  { %8 = vsyncpa [#allocation3], 0  ;;  %s1401_s0 = inlined_call_operand.hbm [shape: bf16[64,784], index: 0, kind: input, shape index: {}]   ;;  %s1402_s1 = inlined_call_operand.hbm [shape: bf16[784,128], index: 1, kind: input, shape index: {}]   ;;  %s1403_s2 = inlined_call_operand.vmem [shape: f32[1,128], index: 2, kind: input, shape index: {}]   ;;  %s1404_s3 = inlined_call_operand.hbm [shape: f32[64,128], index: 3, kind: output, shape index: {}]  }
   0x1   :  { %9 = vsyncpa [#allocation6], 0 }
   0x2   :  { %10 = vsyncpa [#allocation4], 0  ;;  %s1317_s12 = smov [#allocation2]   ;;  %s1245_s16 = scalar_lea.hbm %s1401_s0, 3584 }
   0x3   :  { %s16_s13 = sshll.u32 %s1317_s12, 4  ;;  %p1246_p0 = scmp.ne.s32.totalorder %s1401_s0, %s1245_s16  ;;  %s17_s13 = int_to_ptr.vmem [resolvable:$true] %s16_s13 }
   0x4   :  { %p1249_p1 = scmp.lt.u32.totalorder %s1245_s16, %s1401_s0 }
   0x6   :  { %p1251_p2 = pnand %p1249_p1, %p1246_p0 }
   0x8   :  { %1254 = shalt.err (!%p1251_p2)
}
   0x9   :  { %s1255_s21 = scalar_lea.vmem %s17_s13, 3584  ;;  %p1260_p4 = scmp.lt.s32.totalorder %s17_s13, %s17_s13 }
   0xa   :  { %p1256_p3 = scmp.ne.s32.totalorder %s17_s13, %s1255_s21  ;;  %p1261_p5 = scmp.lt.s32.totalorder %s1255_s21, %s1255_s21 }
   0xc   :  { %p1262_p6 = por %p1261_p5, %p1260_p4 }
   0xe   :  { %p1263_p7 = pnand %p1262_p6, %p1256_p3 }
  0x10   :  { %1266 = shalt.err (!%p1263_p7)
}
  0x11   :  { %s1318_s22 = smov 448   ;;  %s1319_s23 = smov 28  }
  0x12   :  { %22 = dma.hbm_to_vmem [thread:$0]  %s1401_s0, 3584, %s17_s13, [#allocation3], %s1318_s22, %s1318_s22, %s1319_s23  }
  0x13   :  { %s1320_s26 = smov [#allocation5]   ;;  %s1267_s30 = scalar_lea.hbm %s1402_s1, 6272 }
  0x14   :  { %s28_s27 = sshll.u32 %s1320_s26, 4  ;;  %p1268_p8 = scmp.ne.s32.totalorder %s1402_s1, %s1267_s30  ;;  %s29_s27 = int_to_ptr.vmem [resolvable:$true] %s28_s27 }
  0x15   :  { %p1271_p9 = scmp.lt.u32.totalorder %s1267_s30, %s1402_s1 }
  0x17   :  { %p1273_p10 = pnand %p1271_p9, %p1268_p8 }
  0x19   :  { %1276 = shalt.err (!%p1273_p10)
}
  0x1a   :  { %s1277_s8 = scalar_lea.vmem %s29_s27, 6272  ;;  %p1282_p12 = scmp.lt.s32.totalorder %s29_s27, %s29_s27 }
  0x1b   :  { %p1278_p11 = scmp.ne.s32.totalorder %s29_s27, %s1277_s8  ;;  %p1283_p13 = scmp.lt.s32.totalorder %s1277_s8, %s1277_s8 }
  0x1d   :  { %p1284_p0 = por %p1283_p13, %p1282_p12 }
  0x1f   :  { %p1285_p1 = pnand %p1284_p0, %p1278_p11 }
  0x21   :  { %1288 = shalt.err (!%p1285_p1)
}
  0x22   :  { %s1321_s0 = smov 64   ;;  %s1322_s9 = smov 4  }
  0x23   :  { %34 = dma.hbm_to_vmem [thread:$0]  %s1402_s1, 6272, %s29_s27, [#allocation6], %s1321_s0, %s1321_s0, %s1322_s9  }
  0x24   :  { %1311 = dma.done.wait [#allocation3], 3584  }
  0x25   :  { %1312 = vsyncadd [#allocation3], 4294963712 }
  0x26   :  { %1313 = dma.done.wait [#allocation6], 6272  }
  0x27   :  { %1314 = vsyncadd [#allocation6], 4294961024  ;;  %v1156_v0 = vld [vmem:[#allocation5 + $0x40] sm:$0xff]   ;;  %v1160_v4 = vld [vmem:[#allocation5 + $0x48] sm:$0xff]   ;;  %vm615_vm0 = vcmask 130048  }
  0x28   :  { %v1157_v1 = vld [vmem:[#allocation5 + $0xc0] sm:$0xff]   ;;  %996 = vmatprep.subr.bf16.mxu0 %v1156_v0  ;;  %v1161_v5 = vld [vmem:[#allocation5 + $0xc8] sm:$0xff]   ;;  %v1164_v8 = vld [vmem:[#allocation5 + $0x50] sm:$0xff]  }
  0x29   :  { %v1158_v2 = vld [vmem:[#allocation5] sm:$0xff]   ;;  %1036 = vmatprep.subr.bf16.mxu1 %v1157_v1  ;;  %v1162_v6 = vld [vmem:[#allocation5 + $0x8] sm:$0xff]   ;;  %v1165_v9 = vld [vmem:[#allocation5 + $0xd0] sm:$0xff]  }
  0x2a   :  { %v1159_v3 = vld [vmem:[#allocation5 + $0x80] sm:$0xff]   ;;  %997 = vmatpush3.bf16.msra.mxu0 %v1158_v2  ;;  %v1163_v7 = vld [vmem:[#allocation5 + $0x88] sm:$0xff]   ;;  %v1166_v10 = vld [vmem:[#allocation5 + $0x10] sm:$0xff]  }
  0x2b   :  { %1037 = vmatpush3.bf16.msra.mxu1 %v1159_v3  ;;  %998 = vmatprep.subr.bf16.mxu0 %v1160_v4  ;;  %v1167_v11 = vld [vmem:[#allocation5 + $0x90] sm:$0xff]   ;;  %v1168_v12 = vld [vmem:[#allocation5 + $0x58] sm:$0xff]   ;;  %v1172_v16 = vld [vmem:[#allocation5 + $0x60] sm:$0xff]  }
  0x2c   :  { %1038 = vmatprep.subr.bf16.mxu1 %v1161_v5  ;;  %v1169_v13 = vld [vmem:[#allocation5 + $0xd8] sm:$0xff]   ;;  %v1173_v17 = vld [vmem:[#allocation5 + $0xe0] sm:$0xff]   ;;  %v1176_v20 = vld [vmem:[#allocation5 + $0x68] sm:$0xff]  }
  0x2d   :  { %v1170_v14 = vld [vmem:[#allocation5 + $0x18] sm:$0xff]   ;;  %v1174_v18 = vld [vmem:[#allocation5 + $0x20] sm:$0xff]   ;;  %v1177_v21 = vld [vmem:[#allocation5 + $0xe8] sm:$0xff]  }
  0x2e   :  { %999 = vmatpush3.bf16.msra.mxu0 %v1162_v6  ;;  %v1171_v15 = vld [vmem:[#allocation5 + $0x98] sm:$0xff]   ;;  %v1175_v19 = vld [vmem:[#allocation5 + $0xa0] sm:$0xff]   ;;  %v1178_v22 = vld [vmem:[#allocation5 + $0x28] sm:$0xff]  }
  0x2f   :  { %1039 = vmatpush3.bf16.msra.mxu1 %v1163_v7  ;;  %1000 = vmatprep.subr.bf16.mxu0 %v1164_v8  ;;  %v1179_v23 = vld [vmem:[#allocation5 + $0xa8] sm:$0xff]   ;;  %v1180_v24 = vld [vmem:[#allocation5 + $0x70] sm:$0xff]   ;;  %v1184_v28 = vld [vmem:[#allocation5 + $0x78] sm:$0xff]  }
  0x30   :  { %1040 = vmatprep.subr.bf16.mxu1 %v1165_v9  ;;  %v1181_v25 = vld [vmem:[#allocation5 + $0xf0] sm:$0xff]   ;;  %v1185_v29 = vld [vmem:[#allocation5 + $0xf8] sm:$0xff]   ;;  %v1190_v33 = vld [vmem:[#allocation2 + $0x4] ss:$28 sps:$4 sm:$0xff]  }
  0x31   :  { %v1182_v26 = vld [vmem:[#allocation5 + $0x30] sm:$0xff]   ;;  %v1186_v30 = vld [vmem:[#allocation5 + $0x38] sm:$0xff]   ;;  %v1191_v34 = vld [vmem:[#allocation2 + $0x8] ss:$28 sps:$4 sm:$0xff]   ;;  %660 = vmatprep.mubr.bf16.mxu0 %v1190_v33 }
  0x32   :  { %1001 = vmatpush3.bf16.msra.mxu0 %v1166_v10  ;;  %v1183_v27 = vld [vmem:[#allocation5 + $0xb0] sm:$0xff]   ;;  %v1187_v31 = vld [vmem:[#allocation5 + $0xb8] sm:$0xff]   ;;  %v1193_v35 = vld [vmem:[#allocation2 + $0xc] ss:$28 sps:$4 sm:$0xff]  }
  0x33   :  { %1041 = vmatpush3.bf16.msra.mxu1 %v1167_v11  ;;  %1002 = vmatprep.subr.bf16.mxu0 %v1168_v12  ;;  %v1188_v32 = vld [vmem:[#allocation2] ss:$28 sps:$4 sm:$0xff]   ;;  %v1196_v38 = vld [vmem:[#allocation5 + $0x148] sm:$0xff]   ;;  %v1202_v42 = vld [vmem:[#allocation2 + $0x38] ss:$28 sps:$4 sm:$0xff]  }
  0x34   :  { %1042 = vmatprep.subr.bf16.mxu1 %v1169_v13  ;;  %v1194_v36 = vld [vmem:[#allocation5 + $0x140] sm:$0xff]   ;;  %725 = vmatprep.mubr.bf16.mxu1 %v1193_v35  ;;  %v1197_v39 = vld [vmem:[#allocation5 + $0x108] sm:$0xff]   ;;  %v1198_v40 = vld [vmem:[#allocation2 + $0x3c] ss:$28 sps:$4 sm:$0xff]  }
  0x35   :  { %v1195_v37 = vld [vmem:[#allocation5 + $0x100] sm:$0xff]   ;;  %v1204_v44 = vld [vmem:[#allocation5 + $0x150] sm:$0xff]   ;;  %v1206_v46 = vld [vmem:[#allocation5 + $0x158] sm:$0xff]  }
  0x36   :  { %1003 = vmatpush3.bf16.msra.mxu0 %v1170_v14  ;;  %v1200_v41 = vld [vmem:[#allocation2 + $0x44] ss:$28 sps:$4 sm:$0xff]   ;;  %v1205_v45 = vld [vmem:[#allocation5 + $0x110] sm:$0xff]   ;;  %v1207_v47 = vld [vmem:[#allocation5 + $0x118] sm:$0xff]  }
  0x37   :  { %1043 = vmatpush3.bf16.msra.mxu1 %v1171_v15  ;;  %1004 = vmatprep.subr.bf16.mxu0 %v1172_v16  ;;  %v1203_v43 = vld [vmem:[#allocation2 + $0x40] ss:$28 sps:$4 sm:$0xff]   ;;  %v1208_v48 = vld [vmem:[#allocation2 + $0x74] ss:$28 sps:$4 sm:$0xff]   ;;  %v1216_v54 = vld [vmem:[#allocation5 + $0x168] sm:$0xff]  }
  0x38   :  { %1044 = vmatprep.subr.bf16.mxu1 %v1173_v17  ;;  %v1210_v49 = vld [vmem:[#allocation2 + $0x7c] ss:$28 sps:$4 sm:$0xff]   ;;  %v1212_v50 = vld [vmem:[#allocation2 + $0x70] ss:$28 sps:$4 sm:$0xff]   ;;  %v1214_v51 = vld [vmem:[#allocation5 + $0x160] sm:$0xff]  }
  0x39   :  { %v1213_v52 = vld [vmem:[#allocation2 + $0x78] ss:$28 sps:$4 sm:$0xff]   ;;  %v1215_v53 = vld [vmem:[#allocation5 + $0x120] sm:$0xff]   ;;  %v1218_v55 = vld [vmem:[#allocation2 + $0xac] ss:$28 sps:$4 sm:$0xff]  }
  0x3a   :  { %1005 = vmatpush3.bf16.msra.mxu0 %v1174_v18  ;;  %v1220_v56 = vld [vmem:[#allocation2 + $0xb4] ss:$28 sps:$4 sm:$0xff]   ;;  %v1217_v57 = vld [vmem:[#allocation5 + $0x128] sm:$0xff]   ;;  %v1226_v62 = vld [vmem:[#allocation5 + $0x178] sm:$0xff]  }
  0x3b   :  { %1045 = vmatpush3.bf16.msra.mxu1 %v1175_v19  ;;  %1006 = vmatprep.subr.bf16.mxu0 %v1176_v20  ;;  %v1224_v58 = vld [vmem:[#allocation5 + $0x170] sm:$0xff]   ;;  %v1222_v59 = vld [vmem:[#allocation2 + $0xa8] ss:$28 sps:$4 sm:$0xff]   ;;  %v1233_v0 = vld [vmem:[#allocation2 + $0xbc] ss:$28 sps:$4 sm:$0xff]  }
  0x3c   :  { %1046 = vmatprep.subr.bf16.mxu1 %v1177_v21  ;;  %v1223_v60 = vld [vmem:[#allocation2 + $0xb0] ss:$28 sps:$4 sm:$0xff]   ;;  %v1227_v1 = vld [vmem:[#allocation5 + $0x138] sm:$0xff]   ;;  %v1234_v3 = vld [vmem:[#allocation5 + $0x180] sm:$0xff]  }
  0x3d   :  { %v1225_v61 = vld [vmem:[#allocation5 + $0x130] sm:$0xff]   ;;  %v1235_v5 = vld [vmem:[#allocation2 + $0x4c] ss:$28 sps:$4 sm:$0xff]   ;;  %v1240_v9 = vld [vmem:[#allocation2 + $0x84] ss:$28 sps:$4 sm:$0xff]  }
  0x3e   :  { %1007 = vmatpush3.bf16.msra.mxu0 %v1178_v22  ;;  %v1230_v63 = vld [vmem:[#allocation2 + $0x14] ss:$28 sps:$4 sm:$0xff]   ;;  %v1238_v7 = vld [vmem:[#allocation2 + $0x48] ss:$28 sps:$4 sm:$0xff]   ;;  %v1243_v11 = vld [vmem:[#allocation2 + $0x80] ss:$28 sps:$4 sm:$0xff]  }
  0x3f   :  { %1047 = vmatpush3.bf16.msra.mxu1 %v1179_v23  ;;  %1008 = vmatprep.subr.bf16.mxu0 %v1180_v24  ;;  %v1228_v2 = vld [vmem:[#allocation2 + $0x10] ss:$28 sps:$4 sm:$0xff]   ;;  %v1231_v4 = vld [vmem:[#allocation2 + $0xb8] ss:$28 sps:$4 sm:$0xff]   ;;  %v1242_v10 = vld [vmem:[#allocation2 + $0x88] ss:$28 sps:$4 sm:$0xff]  }
  0x40   :  { %1048 = vmatprep.subr.bf16.mxu1 %v1181_v25  ;;  %v1237_v6 = vld [vmem:[#allocation2 + $0x18] ss:$28 sps:$4 sm:$0xff]   ;;  %v1239_v8 = vld [vmem:[#allocation2 + $0x50] ss:$28 sps:$4 sm:$0xff]   ;;  %v1244_v12 = vld [vmem:[#allocation2 + $0xc0] ss:$28 sps:$4 sm:$0xff]  }
  0x41   :  { %v914_v14 = vld [vmem:[%s1403_s2] ss:$0 sm:$0xff]  ;;  %s1323_s2 = smov [#allocation7]  }
  0x42   :  { %1009 = vmatpush3.bf16.msra.mxu0 %v1182_v26  ;;  %s901_s13 = sshll.u32 %s1323_s2, 4  ;;  %s902_s13 = int_to_ptr.vmem [resolvable:$true] %s901_s13 }
  0x43   :  { %1049 = vmatpush3.bf16.msra.mxu1 %v1183_v27  ;;  %1010 = vmatprep.subr.bf16.mxu0 %v1184_v28  ;;  %s1289_s14 = scalar_lea.vmem %s902_s13, 1024  ;;  %p1294_p3 = scmp.lt.s32.totalorder %s902_s13, %s902_s13 }
  0x44   :  { %1050 = vmatprep.subr.bf16.mxu1 %v1185_v29  ;;  %p1290_p2 = scmp.ne.s32.totalorder %s902_s13, %s1289_s14  ;;  %p1295_p4 = scmp.lt.s32.totalorder %s1289_s14, %s1289_s14 }
  0x46   :  { %1011 = vmatpush3.bf16.msra.mxu0 %v1186_v30  ;;  %p1296_p5 = por %p1295_p4, %p1294_p3 }
  0x47   :  { %1051 = vmatpush3.bf16.msra.mxu1 %v1187_v31  ;;  %1076 = vmatprep.subr.bf16.mxu0 %v1194_v36 }
  0x48   :  { %1131 = vmatprep.subr.bf16.mxu1 %v1194_v36  ;;  %p1297_p6 = pnand %p1296_p5, %p1290_p2 }
  0x49   :  { %661 = vmatmul.mubr.bf16.vlgmr.msra.gmra.mrb[0].mxu0 %v1188_v32 }
  0x4a   :  { %726 = vmatmul.mubr.bf16.vlgmr.msra.gmra.mrb[0].mxu1 %v1191_v34  ;;  %1077 = vmatpush3.bf16.msra.mxu0 %v1195_v37 }
  0x4b   :  { %1139 = vmatpush3.bf16.msra.mxu1 %v1195_v37  ;;  %1078 = vmatprep.subr.bf16.mxu0 %v1196_v38 }
  0x4c   :  { %1132 = vmatprep.subr.bf16.mxu1 %v1196_v38  ;;  %668 = vmatprep.mubr.bf16.mxu0 %v1198_v40 }
  0x4d   :  { %733 = vmatprep.mubr.bf16.mxu1 %v1200_v41 }
  0x4e   :  { %1079 = vmatpush3.bf16.msra.mxu0 %v1197_v39 }
  0x4f   :  { %1140 = vmatpush3.bf16.msra.mxu1 %v1197_v39  ;;  %1080 = vmatprep.subr.bf16.mxu0 %v1204_v44 }
  0x50   :  { %1133 = vmatprep.subr.bf16.mxu1 %v1204_v44 }
  0x51   :  { %669 = vmatmul.mubr.bf16.gmra.mrb[4].mxu0 %v1202_v42 }
  0x52   :  { %734 = vmatmul.mubr.bf16.gmra.mrb[4].mxu1 %v1203_v43  ;;  %1081 = vmatpush3.bf16.msra.mxu0 %v1205_v45 }
  0x53   :  { %1141 = vmatpush3.bf16.msra.mxu1 %v1205_v45  ;;  %1082 = vmatprep.subr.bf16.mxu0 %v1206_v46 }
  0x54   :  { %1134 = vmatprep.subr.bf16.mxu1 %v1206_v46  ;;  %676 = vmatprep.mubr.bf16.mxu0 %v1208_v48 }
  0x55   :  { %741 = vmatprep.mubr.bf16.mxu1 %v1210_v49 }
  0x56   :  { %1083 = vmatpush3.bf16.msra.mxu0 %v1207_v47 }
  0x57   :  { %1142 = vmatpush3.bf16.msra.mxu1 %v1207_v47  ;;  %1084 = vmatprep.subr.bf16.mxu0 %v1214_v51 }
  0x58   :  { %1135 = vmatprep.subr.bf16.mxu1 %v1214_v51 }
  0x59   :  { %677 = vmatmul.mubr.bf16.gmra.mrb[8].mxu0 %v1212_v50 }
  0x5a   :  { %742 = vmatmul.mubr.bf16.gmra.mrb[8].mxu1 %v1213_v52  ;;  %1085 = vmatpush3.bf16.msra.mxu0 %v1215_v53 }
  0x5b   :  { %684 = vmatprep.mubr.bf16.mxu0 %v1218_v55  ;;  %1143 = vmatpush3.bf16.msra.mxu1 %v1215_v53 }
  0x5c   :  { %1086 = vmatprep.subr.bf16.mxu0 %v1216_v54  ;;  %1136 = vmatprep.subr.bf16.mxu1 %v1216_v54 }
  0x5d   :  { %749 = vmatprep.mubr.bf16.mxu1 %v1220_v56 }
  0x5e   :  { %1087 = vmatpush3.bf16.msra.mxu0 %v1217_v57 }
  0x5f   :  { %1144 = vmatpush3.bf16.msra.mxu1 %v1217_v57  ;;  %1088 = vmatprep.subr.bf16.mxu0 %v1224_v58 }
  0x60   :  { %1137 = vmatprep.subr.bf16.mxu1 %v1224_v58 }
  0x61   :  { %685 = vmatmul.mubr.bf16.gmra.mrb[12].mxu0 %v1222_v59 }
  0x62   :  { %750 = vmatmul.mubr.bf16.gmra.mrb[12].mxu1 %v1223_v60  ;;  %790 = vmatprep.mubr.bf16.mxu0 %v1230_v63 }
  0x63   :  { %1089 = vmatpush3.bf16.msra.mxu0 %v1225_v61  ;;  %1145 = vmatpush3.bf16.msra.mxu1 %v1225_v61 }
  0x64   :  { %1090 = vmatprep.subr.bf16.mxu0 %v1226_v62  ;;  %1138 = vmatprep.subr.bf16.mxu1 %v1226_v62 }
  0x65   :  { %814 = vmatprep.mubr.bf16.mxu1 %v1233_v0 }
  0x67   :  { %1091 = vmatpush3.bf16.msra.mxu0 %v1227_v1  ;;  %1146 = vmatpush3.bf16.msra.mxu1 %v1227_v1 }
  0x68   :  { %1121 = vmatprep.subr.bf16.mxu1 %v1234_v3 }
  0x6a   :  { %791 = vmatmul.mubr.bf16.vlgmr.msra.gmra.mrb[16].mxu0 %v1228_v2  ;;  %815 = vmatmul.mubr.bf16.vlgmr.msra.gmra.mrb[16].mxu1 %v1231_v4 }
  0x6b   :  { %798 = vmatprep.mubr.bf16.mxu0 %v1235_v5  ;;  %1122 = vmatpush3.bf16.msra.mxu1 %v1234_v3 }
  0x6c   :  { %1123 = vmatprep.mubr.msk.bf16.mxu1 %vm615_vm0, %v1237_v6 }
  0x72   :  { %799 = vmatmul.mubr.bf16.gmra.mrb[20].mxu0 %v1238_v7  ;;  %1124 = vmatmul.mubr.msk.bf16.vlgmr.msra.gmra.mrb[20].mxu1 %vm615_vm0, %v1239_v8 }
  0x73   :  { %806 = vmatprep.mubr.bf16.mxu0 %v1240_v9  ;;  %1127 = vmatprep.mubr.msk.bf16.mxu1 %vm615_vm0, %v1242_v10 }
  0x7a   :  { %807 = vmatmul.mubr.bf16.gmra.mrb[24].mxu0 %v1243_v11  ;;  %1128 = vmatmul.mubr.msk.bf16.gmra.mrb[24].mxu1 %vm615_vm0, %v1244_v12 }
 0x11c   :  { %v1012_v13 = vpop.f32.mrb[0].mxu0 }
 0x11d   :  { %v1013_v15 = vpop.f32.mrb[1].mxu0  ;;  %v1052_v16 = vpop.f32.mrb[0].mxu1 }
 0x11e   :  { %v1014_v17 = vadd.f32 %v1013_v15, %v1012_v13  ;;  %v1015_v18 = vpop.f32.mrb[2].mxu0  ;;  %v1053_v19 = vpop.f32.mrb[1].mxu1 }
 0x11f   :  { %v1016_v20 = vpop.f32.mrb[3].mxu0  ;;  %v1054_v21 = vadd.f32 %v1053_v19, %v1052_v16  ;;  %v1055_v22 = vpop.f32.mrb[2].mxu1 }
 0x120   :  { %v663_v23 = vadd.f32 %v1014_v17, %v914_v14  ;;  %v1017_v24 = vadd.f32 %v1016_v20, %v1015_v18  ;;  %v1056_v25 = vpop.f32.mrb[3].mxu1 }
 0x121   :  { %v1057_v26 = vadd.f32 %v1056_v25, %v1055_v22 }
 0x122   :  { %v666_v27 = vadd.f32 %v1017_v24, %v914_v14  ;;  %v728_v28 = vadd.f32 %v1054_v21, %v663_v23 }
 0x124   :  { %v1377_v29 = vadd.f32 %v1057_v26, %v666_v27  ;;  %v1018_v30 = vpop.f32.mrb[4].mxu0 }
 0x125   :  { %v1019_v31 = vpop.f32.mrb[5].mxu0  ;;  %v1058_v32 = vpop.f32.mrb[4].mxu1 }
 0x126   :  { %v1020_v33 = vadd.f32 %v1019_v31, %v1018_v30  ;;  %v1021_v34 = vpop.f32.mrb[6].mxu0  ;;  %v1059_v35 = vpop.f32.mrb[5].mxu1 }
 0x127   :  { %v1022_v36 = vpop.f32.mrb[7].mxu0  ;;  %v1060_v37 = vadd.f32 %v1059_v35, %v1058_v32  ;;  %v1061_v38 = vpop.f32.mrb[6].mxu1 }
 0x128   :  { %v671_v39 = vadd.f32 %v1020_v33, %v914_v14  ;;  %v1023_v40 = vadd.f32 %v1022_v36, %v1021_v34  ;;  %v1062_v41 = vpop.f32.mrb[7].mxu1 }
 0x129   :  { %v1063_v42 = vadd.f32 %v1062_v41, %v1061_v38 }
 0x12a   :  { %v674_v43 = vadd.f32 %v1023_v40, %v914_v14  ;;  %v736_v44 = vadd.f32 %v1060_v37, %v671_v39 }
 0x12c   :  { %v1379_v45 = vadd.f32 %v1063_v42, %v674_v43  ;;  %v1024_v46 = vpop.f32.mrb[8].mxu0 }
 0x12d   :  { %v1025_v47 = vpop.f32.mrb[9].mxu0  ;;  %v1064_v48 = vpop.f32.mrb[8].mxu1 }
 0x12e   :  { %v1026_v49 = vadd.f32 %v1025_v47, %v1024_v46  ;;  %v1027_v50 = vpop.f32.mrb[10].mxu0  ;;  %v1065_v51 = vpop.f32.mrb[9].mxu1 }
 0x12f   :  { %v1028_v52 = vpop.f32.mrb[11].mxu0  ;;  %v1066_v53 = vadd.f32 %v1065_v51, %v1064_v48  ;;  %v1067_v54 = vpop.f32.mrb[10].mxu1 }
 0x130   :  { %v679_v55 = vadd.f32 %v1026_v49, %v914_v14  ;;  %v1029_v56 = vadd.f32 %v1028_v52, %v1027_v50  ;;  %v1068_v57 = vpop.f32.mrb[11].mxu1 }
 0x131   :  { %v1069_v58 = vadd.f32 %v1068_v57, %v1067_v54 }
 0x132   :  { %v682_v59 = vadd.f32 %v1029_v56, %v914_v14  ;;  %v1381_v60 = vadd.f32 %v1066_v53, %v679_v55 }
 0x134   :  { %v1383_v61 = vadd.f32 %v1069_v58, %v682_v59  ;;  %v1030_v62 = vpop.f32.mrb[12].mxu0 }
 0x135   :  { %v1031_v63 = vpop.f32.mrb[13].mxu0  ;;  %v1070_v0 = vpop.f32.mrb[12].mxu1 }
 0x136   :  { %v1032_v1 = vadd.f32 %v1031_v63, %v1030_v62  ;;  %v1033_v2 = vpop.f32.mrb[14].mxu0  ;;  %v1071_v3 = vpop.f32.mrb[13].mxu1 }
 0x137   :  { %v1034_v4 = vpop.f32.mrb[15].mxu0  ;;  %v1072_v5 = vadd.f32 %v1071_v3, %v1070_v0  ;;  %v1073_v6 = vpop.f32.mrb[14].mxu1 }
 0x138   :  { %v687_v7 = vadd.f32 %v1032_v1, %v914_v14  ;;  %v1035_v8 = vadd.f32 %v1034_v4, %v1033_v2  ;;  %v1074_v9 = vpop.f32.mrb[15].mxu1 }
 0x139   :  { %v1075_v10 = vadd.f32 %v1074_v9, %v1073_v6 }
 0x13a   :  { %v690_v11 = vadd.f32 %v1035_v8, %v914_v14  ;;  %v752_v12 = vadd.f32 %v1072_v5, %v687_v7 }
 0x13c   :  { %v755_v13 = vadd.f32 %v1075_v10, %v690_v11 }
 0x13d   :  { %v1092_v15 = vpop.f32.mrb[16].mxu0  ;;  %v1110_v16 = vpop.f32.mrb[16].mxu1 }
 0x13e   :  { %v1093_v17 = vpop.f32.mrb[17].mxu0  ;;  %v1111_v19 = vpop.f32.mrb[17].mxu1 }
 0x13f   :  { %v1094_v18 = vadd.f32 %v1093_v17, %v1092_v15  ;;  %v1095_v20 = vpop.f32.mrb[18].mxu0  ;;  %v1112_v21 = vadd.f32 %v1111_v19, %v1110_v16  ;;  %v1113_v22 = vpop.f32.mrb[18].mxu1 }
 0x140   :  { %v1096_v23 = vpop.f32.mrb[19].mxu0  ;;  %v1114_v25 = vpop.f32.mrb[19].mxu1 }
 0x141   :  { %v1097_v24 = vadd.f32 %v1096_v23, %v1095_v20  ;;  %v793_v26 = vadd.f32 %v1094_v18, %v728_v28  ;;  %v1115_v27 = vadd.f32 %v1114_v25, %v1113_v22  ;;  %v817_v30 = vadd.f32 %v1112_v21, %v752_v12 }
 0x143   :  { %v796_v31 = vadd.f32 %v1097_v24, %v1377_v29  ;;  %v820_v32 = vadd.f32 %v1115_v27, %v755_v13 }
 0x145   :  { %v1098_v14 = vpop.f32.mrb[20].mxu0  ;;  %v1125_v33 = vpop.f32.mrb[20].mxu1 }
 0x146   :  { %v1099_v34 = vpop.f32.mrb[21].mxu0  ;;  %v857_v36 = vpop.f32.mrb[21].mxu1 }
 0x147   :  { %v1100_v35 = vadd.f32 %v1099_v34, %v1098_v14  ;;  %v1101_v37 = vpop.f32.mrb[22].mxu0  ;;  %v858_v38 = vadd.f32 %v857_v36, %v793_v26  ;;  %v1126_v39 = vpop.f32.mrb[22].mxu1 }
 0x148   :  { %v1102_v40 = vpop.f32.mrb[23].mxu0  ;;  %v860_v43 = vpop.f32.mrb[23].mxu1 }
 0x149   :  { %v801_v41 = vadd.f32 %v1100_v35, %v736_v44  ;;  %v1103_v42 = vadd.f32 %v1102_v40, %v1101_v37  ;;  %888 = vst [vmem:[#allocation7] sm:$0xff] %v858_v38  ;;  %v861_v46 = vadd.f32 %v860_v43, %v796_v31 }
 0x14b   :  { %v866_v28 = vadd.f32 %v1125_v33, %v801_v41  ;;  %v804_v47 = vadd.f32 %v1103_v42, %v1379_v45  ;;  %889 = vst [vmem:[#allocation7 + $0x8] sm:$0xff] %v861_v46 }
 0x14d   :  { %890 = vst [vmem:[#allocation7 + $0x10] sm:$0xff] %v866_v28  ;;  %v869_v29 = vadd.f32 %v1126_v39, %v804_v47  ;;  %v1104_v48 = vpop.f32.mrb[24].mxu0  ;;  %v1129_v49 = vpop.f32.mrb[24].mxu1 }
 0x14e   :  { %v1105_v50 = vpop.f32.mrb[25].mxu0  ;;  %v882_v51 = vadd.f32 %v1129_v49, %v817_v30  ;;  %v873_v53 = vpop.f32.mrb[25].mxu1 }
 0x14f   :  { %891 = vst [vmem:[#allocation7 + $0x18] sm:$0xff] %v869_v29  ;;  %v1106_v52 = vadd.f32 %v1105_v50, %v1104_v48  ;;  %v1107_v54 = vpop.f32.mrb[26].mxu0  ;;  %v1130_v55 = vpop.f32.mrb[26].mxu1 }
 0x150   :  { %v1108_v44 = vpop.f32.mrb[27].mxu0  ;;  %894 = vst [vmem:[#allocation7 + $0x30] sm:$0xff] %v882_v51  ;;  %v885_v57 = vadd.f32 %v1130_v55, %v820_v32  ;;  %v876_v59 = vpop.f32.mrb[27].mxu1 }
 0x151   :  { %v809_v56 = vadd.f32 %v1106_v52, %v1381_v60  ;;  %v1109_v58 = vadd.f32 %v1108_v44, %v1107_v54 }
 0x152   :  { %895 = vst [vmem:[#allocation7 + $0x38] sm:$0xff] %v885_v57 }
 0x153   :  { %v874_v45 = vadd.f32 %v873_v53, %v809_v56  ;;  %v812_v62 = vadd.f32 %v1109_v58, %v1383_v61 }
 0x155   :  { %892 = vst [vmem:[#allocation7 + $0x20] sm:$0xff] %v874_v45  ;;  %v877_v63 = vadd.f32 %v876_v59, %v812_v62 }
 0x157   :  { %893 = vst [vmem:[#allocation7 + $0x28] sm:$0xff] %v877_v63 }
 0x158   :  { %1300 = shalt.err (!%p1297_p6)
}
 0x159   :  { %s1301_s17 = scalar_lea.hbm %s1404_s3, 1024 }
 0x15a   :  { %p1302_p7 = scmp.ne.s32.totalorder %s1404_s3, %s1301_s17  ;;  %p1305_p8 = scmp.lt.u32.totalorder %s1301_s17, %s1404_s3 }
 0x15c   :  { %p1307_p9 = pnand %p1305_p8, %p1302_p7 }
 0x15e   :  { %1310 = shalt.err (!%p1307_p9)
}
 0x15f   :  { %s1324_s22 = smov 128   ;;  %s1325_s23 = smov 8  }
 0x160   :  { %907 = dma.vmem_to_hbm [thread:$0]  %s902_s13, 1024, %s1404_s3, [#allocation4], %s1324_s22, %s1324_s22, %s1325_s23  }
 0x161   :  { %1315 = dma.done.wait [#allocation4], 1024  }
 0x162   :  { %1316 = vsyncadd [#allocation4], 4294966272 }
 0x163   :  { %911 = vsyncpa [#allocation3], 1 }
 0x164   :  { %912 = vsyncpa [#allocation6], 1 }
 0x165   :  { %913 = vsyncpa [#allocation4], 1 }

</bundles_post_ra>
